<compile_context>
chip_gen: v7x
topology: tpu7x:2x2x1
jax: 0.10.0
libtpu: 0.0.40
codegen_flags: <defaults>
</compile_context>

<pallas_src>
import jax
import jax.numpy as jnp
from jax.experimental import pallas as pl
from jax.experimental.pallas import tpu as pltpu

# 3x3 neighborhood offsets (dy, dx), row-major, center excluded — identical
# ordering to torch's unfold indices [0,1,2,3,5,6,7,8].
NEIGHBOR_OFFSETS = (
    (-1, -1), (-1, 0), (-1, 1),
    (0, -1),           (0, 1),
    (1, -1),  (1, 0),  (1, 1),
)


def _fill_padded_scratch(x_ref, xp_ref):
    """Copy the (H, W, TL, D) input block into a zero-haloed VMEM scratch.

    xp_ref has shape (H+2, W+2, TL, D); the 1-wide halo is zero so border
    neighbors fall out of the shifted reads automatically (Unfold padding=1).
    """
    _, H, W, TL, D = x_ref.shape
    dt = xp_ref.dtype
    # Four thin outer-dim border strips + one interior copy (all cheap VMEM).
    xp_ref[0, :, :, :] = jnp.zeros((W + 2, TL, D), dt)
    xp_ref[H + 1, :, :, :] = jnp.zeros((W + 2, TL, D), dt)
    xp_ref[1:H + 1, 0, :, :] = jnp.zeros((H, TL, D), dt)
    xp_ref[1:H + 1, W + 1, :, :] = jnp.zeros((H, TL, D), dt)
    xp_ref[1:H + 1, 1:W + 1, :, :] = x_ref[0]


def _store_neighbors(o_ref, slabs, D):
    """Write the 8 shifted slabs as the (..., 8*D) output block."""
    if D % 128 == 0:
        # Per-neighbor strips are already full, lane-aligned vregs.
        for k, slab in enumerate(slabs):
            o_ref[0, :, :, :, k * D:(k + 1) * D] = slab
    else:
        # Assemble one lane-dense (..., 8*D) value and issue a single
        # full-width store; lane packing rides the otherwise idle XLU/VPU.
        o_ref[0] = jnp.concatenate(slabs, axis=-1)


def _neighbor_kernel_full(x_ref, o_ref, xp_ref):
    # x_ref: (1, H, W, TL, D)   o_ref: (1, H, W, TL, 8*D)
    _, H, W, TL, D = x_ref.shape
    _fill_padded_scratch(x_ref, xp_ref)
    slabs = [xp_ref[1 + dy:1 + dy + H, 1 + dx:1 + dx + W, :, :]
             for (dy, dx) in NEIGHBOR_OFFSETS]
    _store_neighbors(o_ref, slabs, D)


def _neighbor_kernel_htile(x_ref, o_ref, xp_ref):
    # x_ref: (1, H, W, TL, D)   full spatial grid, resident across h-tiles
    # o_ref: (1, TH, W, TL, 8*D) one h-tile of the output
    _, H, W, TL, D = x_ref.shape
    TH = o_ref.shape[1]
    _fill_padded_scratch(x_ref, xp_ref)
    row0 = pl.program_id(2) * TH          # first output row of this tile
    slabs = [xp_ref[pl.ds(row0 + dy + 1, TH), 1 + dx:1 + dx + W, :, :]
             for (dy, dx) in NEIGHBOR_OFFSETS]
    _store_neighbors(o_ref, slabs, D)


def _vmem_capacity_bytes():
    try:
        return int(pltpu.get_tpu_info().vmem_capacity_bytes)
    except Exception:
        return 64 * 1024 * 1024            # conservative (v7x-sized) fallback


def _choose_tiles(H, W, L, D, itemsize, vmem_budget, out_block_cap):
    """Pick (TL, TH): the largest tiles whose pipelined VMEM footprint fits
    `vmem_budget`, preferring output blocks <= out_block_cap so large problems
    get several grid steps (software pipelining + v7x megacore)."""
    sub = {4: 8, 2: 16, 1: 32}.get(itemsize, 8)   # dtype-aware sublane multiple
    lane = 128
    tl_cands = sorted({L} | {t for t in range(sub, L, sub) if L % t == 0},
                      reverse=True)
    th_cands = sorted({t for t in range(1, H + 1) if H % t == 0}, reverse=True)
    d_in = -(-D // lane) * lane
    d_out = -(-(8 * D) // lane) * lane

    def _s(tl):
        return -(-tl // sub) * sub

    def in_bytes(tl):
        return H * W * _s(tl) * d_in * itemsize

    def pad_bytes(tl):
        return (H + 2) * (W + 2) * _s(tl) * d_in * itemsize

    def out_bytes(tl, th):
        return th * W * _s(tl) * d_out * itemsize

    def footprint(tl, th):
        # double-buffered in/out blocks + padded-input scratch + the assembled
        # output value held before its store.
        return 2 * in_bytes(tl) + 3 * out_bytes(tl, th) + pad_bytes(tl)

    for cap in (out_block_cap, None):
        for tl in tl_cands:
            for th in th_cands:
                if footprint(tl, th) > vmem_budget:
                    continue
                if cap is not None and out_bytes(tl, th) > cap:
                    continue
                return tl, th
    # TODO(synk): add W-halo tiling as well for extreme H*W*L*D footprints.
    return tl_cands[-1], 1


def patch_neighbor_search(E_flat, H, W, *, tile_l=None, tile_h=None):
    """Pallas TPU implementation of PatchNeighborSearcher.forward."""
    B, P, L, D = E_flat.shape
    assert P == H * W, f"patches ({P}) must equal H*W ({H}*{W}={H * W})"
    itemsize = E_flat.dtype.itemsize

    cap = _vmem_capacity_bytes()
    auto_l, auto_h = _choose_tiles(H, W, L, D, itemsize,
                                   vmem_budget=cap // 2,
                                   out_block_cap=8 * 1024 * 1024)
    TL = auto_l if tile_l is None else tile_l
    TH = auto_h if tile_h is None else tile_h
    assert L % TL == 0 and H % TH == 0

    n_lt, n_ht = L // TL, H // TH
    grid = (B, n_lt, n_ht)
    kernel = _neighbor_kernel_full if TH == H else _neighbor_kernel_htile

    x5 = E_flat.reshape(B, H, W, L, D)            # free, contiguous reshape

    out5 = pl.pallas_call(
        kernel,
        out_shape=jax.ShapeDtypeStruct((B, H, W, L, 8 * D), E_flat.dtype),
        grid=grid,
        in_specs=[pl.BlockSpec((1, H, W, TL, D),
                               lambda b, lt, ht: (b, 0, 0, lt, 0))],
        out_specs=pl.BlockSpec((1, TH, W, TL, 8 * D),
                               lambda b, lt, ht: (b, ht, 0, lt, 0)),
        scratch_shapes=[pltpu.VMEM((H + 2, W + 2, TL, D), E_flat.dtype)],
        compiler_params=pltpu.CompilerParams(
            dimension_semantics=("parallel", "parallel", "parallel"),
            vmem_limit_bytes=min(cap * 3 // 4, 112 * 1024 * 1024),
        ),
        cost_estimate=pl.CostEstimate(
            flops=0, transcendentals=0,
            bytes_accessed=int(9 * B * P * L * D * itemsize)),
    )(x5)

    # (B, H, W, L, 8*D) row-major is exactly (B, P, L*8, D): free reshape.
    return out5.reshape(B, P, L * 8, D)


def patch_neighbor_search_ref(E_flat, H, W):
    """Pure-JAX reference matching the PyTorch module semantics."""
    B, P, L, D = E_flat.shape
    Eg = E_flat.reshape(B, H, W, L, D)
    Ep = jnp.pad(Eg, ((0, 0), (1, 1), (1, 1), (0, 0), (0, 0)))
    slabs = [Ep[:, 1 + dy:1 + dy + H, 1 + dx:1 + dx + W]
             for (dy, dx) in NEIGHBOR_OFFSETS]
    neigh = jnp.stack(slabs, axis=4)              # [B, H, W, L, 8, D]
    return neigh.reshape(B, H * W, L * 8, D)


if __name__ == "__main__":
    key = jax.random.PRNGKey(0)

    # Primary test: single-spatial-tile (common) path.
    B, H, W, L, D = 2, 4, 4, 8, 32
    E_flat = jax.random.normal(key, (B, H * W, L, D), dtype=jnp.float32)
    out = jax.block_until_ready(patch_neighbor_search(E_flat, H, W))
    ref = patch_neighbor_search_ref(E_flat, H, W)
    assert out.shape == (B, H * W, L * 8, D), out.shape
    assert jnp.allclose(out, ref, atol=1e-6, rtol=1e-6), "mismatch vs reference"

    # Second test: force the spatial (H-tiled) fallback path used by large shapes.
    H2, W2 = 8, 4
    E2 = jax.random.normal(jax.random.PRNGKey(0), (B, H2 * W2, L, D),
                           dtype=jnp.float32)
    out2 = jax.block_until_ready(patch_neighbor_search(E2, H2, W2, tile_h=2))
    ref2 = patch_neighbor_search_ref(E2, H2, W2)
    assert out2.shape == (B, H2 * W2, L * 8, D), out2.shape
    assert jnp.allclose(out2, ref2, atol=1e-6, rtol=1e-6), "mismatch (tiled path)"

    print("KERNEL_OK")
</pallas_src>

<mosaic_0001>
module attributes {stable_mosaic.version = 11 : i64} {
  func.func @_neighbor_kernel_full(%arg0: i32, %arg1: i32, %arg2: i32, %arg3: memref<1x4x4x8x32xf32, #tpu.memory_space<vmem>>, %arg4: memref<1x4x4x8x256xf32, #tpu.memory_space<vmem>>, %arg5: memref<6x6x8x32xf32, #tpu.memory_space<vmem>>) attributes {dimension_semantics = [#tpu.dimension_semantics<parallel>, #tpu.dimension_semantics<parallel>, #tpu.dimension_semantics<parallel>], iteration_bounds = array<i64: 2, 1, 1>, scalar_prefetch = 0 : i64, scratch_operands = 1 : i64, tpu.core_type = #tpu.core_type<tc>, window_params = [{transform_indices = @transform_0, window_bounds = array<i64: 1, 4, 4, 8, 32>}, {transform_indices = @transform_1, window_bounds = array<i64: 1, 4, 4, 8, 256>}]} {
    %cst = arith.constant 0.000000e+00 : f32
    %0 = vector.broadcast %cst : f32 to vector<6x8x32xf32>
    %c0 = arith.constant 0 : index
    %c0_0 = arith.constant 0 : index
    %c0_1 = arith.constant 0 : index
    %c0_2 = arith.constant 0 : index
    %1 = vector.load %arg5[%c0, %c0_0, %c0_1, %c0_2] : memref<6x6x8x32xf32, #tpu.memory_space<vmem>>, vector<1x6x8x32xf32>
    %2 = vector.shape_cast %1 : vector<1x6x8x32xf32> to vector<6x8x32xf32>
    %3 = vector.shape_cast %0 : vector<6x8x32xf32> to vector<1x6x8x32xf32>
    tpu.vector_store %arg5[%c0, %c0_0, %c0_1, %c0_2], %3 {strides = array<i32>} : memref<6x6x8x32xf32, #tpu.memory_space<vmem>>, vector<1x6x8x32xf32>,
    %cst_3 = arith.constant 0.000000e+00 : f32
    %4 = vector.broadcast %cst_3 : f32 to vector<6x8x32xf32>
    %c5 = arith.constant 5 : index
    %c0_4 = arith.constant 0 : index
    %c0_5 = arith.constant 0 : index
    %c0_6 = arith.constant 0 : index
    %5 = vector.load %arg5[%c5, %c0_4, %c0_5, %c0_6] : memref<6x6x8x32xf32, #tpu.memory_space<vmem>>, vector<1x6x8x32xf32>
    %6 = vector.shape_cast %5 : vector<1x6x8x32xf32> to vector<6x8x32xf32>
    %7 = vector.shape_cast %4 : vector<6x8x32xf32> to vector<1x6x8x32xf32>
    tpu.vector_store %arg5[%c5, %c0_4, %c0_5, %c0_6], %7 {strides = array<i32>} : memref<6x6x8x32xf32, #tpu.memory_space<vmem>>, vector<1x6x8x32xf32>,
    %cst_7 = arith.constant 0.000000e+00 : f32
    %8 = vector.broadcast %cst_7 : f32 to vector<4x8x32xf32>
    %c1 = arith.constant 1 : index
    %c0_8 = arith.constant 0 : index
    %c0_9 = arith.constant 0 : index
    %c0_10 = arith.constant 0 : index
    %9 = vector.load %arg5[%c1, %c0_8, %c0_9, %c0_10] : memref<6x6x8x32xf32, #tpu.memory_space<vmem>>, vector<4x1x8x32xf32>
    %10 = vector.shape_cast %9 : vector<4x1x8x32xf32> to vector<4x8x32xf32>
    %11 = vector.shape_cast %8 : vector<4x8x32xf32> to vector<4x1x8x32xf32>
    tpu.vector_store %arg5[%c1, %c0_8, %c0_9, %c0_10], %11 {strides = array<i32>} : memref<6x6x8x32xf32, #tpu.memory_space<vmem>>, vector<4x1x8x32xf32>,
    %cst_11 = arith.constant 0.000000e+00 : f32
    %12 = vector.broadcast %cst_11 : f32 to vector<4x8x32xf32>
    %c1_12 = arith.constant 1 : index
    %c5_13 = arith.constant 5 : index
    %c0_14 = arith.constant 0 : index
    %c0_15 = arith.constant 0 : index
    %13 = vector.load %arg5[%c1_12, %c5_13, %c0_14, %c0_15] : memref<6x6x8x32xf32, #tpu.memory_space<vmem>>, vector<4x1x8x32xf32>
    %14 = vector.shape_cast %13 : vector<4x1x8x32xf32> to vector<4x8x32xf32>
    %15 = vector.shape_cast %12 : vector<4x8x32xf32> to vector<4x1x8x32xf32>
    tpu.vector_store %arg5[%c1_12, %c5_13, %c0_14, %c0_15], %15 {strides = array<i32>} : memref<6x6x8x32xf32, #tpu.memory_space<vmem>>, vector<4x1x8x32xf32>,
    %c0_16 = arith.constant 0 : index
    %c0_17 = arith.constant 0 : index
    %c0_18 = arith.constant 0 : index
    %c0_19 = arith.constant 0 : index
    %c0_20 = arith.constant 0 : index
    %16 = vector.load %arg3[%c0_16, %c0_17, %c0_18, %c0_19, %c0_20] : memref<1x4x4x8x32xf32, #tpu.memory_space<vmem>>, vector<1x4x4x8x32xf32>
    %17 = vector.shape_cast %16 : vector<1x4x4x8x32xf32> to vector<4x4x8x32xf32>
    %c1_21 = arith.constant 1 : index
    %c1_22 = arith.constant 1 : index
    %c0_23 = arith.constant 0 : index
    %c0_24 = arith.constant 0 : index
    %18 = vector.load %arg5[%c1_21, %c1_22, %c0_23, %c0_24] : memref<6x6x8x32xf32, #tpu.memory_space<vmem>>, vector<4x4x8x32xf32>
    tpu.vector_store %arg5[%c1_21, %c1_22, %c0_23, %c0_24], %17 {strides = array<i32>} : memref<6x6x8x32xf32, #tpu.memory_space<vmem>>, vector<4x4x8x32xf32>,
    %c0_25 = arith.constant 0 : index
    %c0_26 = arith.constant 0 : index
    %c0_27 = arith.constant 0 : index
    %c0_28 = arith.constant 0 : index
    %19 = vector.load %arg5[%c0_25, %c0_26, %c0_27, %c0_28] : memref<6x6x8x32xf32, #tpu.memory_space<vmem>>, vector<4x4x8x32xf32>
    %c0_29 = arith.constant 0 : index
    %c1_30 = arith.constant 1 : index
    %c0_31 = arith.constant 0 : index
    %c0_32 = arith.constant 0 : index
    %20 = vector.load %arg5[%c0_29, %c1_30, %c0_31, %c0_32] : memref<6x6x8x32xf32, #tpu.memory_space<vmem>>, vector<4x4x8x32xf32>
    %c0_33 = arith.constant 0 : index
    %c2 = arith.constant 2 : index
    %c0_34 = arith.constant 0 : index
    %c0_35 = arith.constant 0 : index
    %21 = vector.load %arg5[%c0_33, %c2, %c0_34, %c0_35] : memref<6x6x8x32xf32, #tpu.memory_space<vmem>>, vector<4x4x8x32xf32>
    %c1_36 = arith.constant 1 : index
    %c0_37 = arith.constant 0 : index
    %c0_38 = arith.constant 0 : index
    %c0_39 = arith.constant 0 : index
    %22 = vector.load %arg5[%c1_36, %c0_37, %c0_38, %c0_39] : memref<6x6x8x32xf32, #tpu.memory_space<vmem>>, vector<4x4x8x32xf32>
    %c1_40 = arith.constant 1 : index
    %c2_41 = arith.constant 2 : index
    %c0_42 = arith.constant 0 : index
    %c0_43 = arith.constant 0 : index
    %23 = vector.load %arg5[%c1_40, %c2_41, %c0_42, %c0_43] : memref<6x6x8x32xf32, #tpu.memory_space<vmem>>, vector<4x4x8x32xf32>
    %c2_44 = arith.constant 2 : index
    %c0_45 = arith.constant 0 : index
    %c0_46 = arith.constant 0 : index
    %c0_47 = arith.constant 0 : index
    %24 = vector.load %arg5[%c2_44, %c0_45, %c0_46, %c0_47] : memref<6x6x8x32xf32, #tpu.memory_space<vmem>>, vector<4x4x8x32xf32>
    %c2_48 = arith.constant 2 : index
    %c1_49 = arith.constant 1 : index
    %c0_50 = arith.constant 0 : index
    %c0_51 = arith.constant 0 : index
    %25 = vector.load %arg5[%c2_48, %c1_49, %c0_50, %c0_51] : memref<6x6x8x32xf32, #tpu.memory_space<vmem>>, vector<4x4x8x32xf32>
    %c2_52 = arith.constant 2 : index
    %c2_53 = arith.constant 2 : index
    %c0_54 = arith.constant 0 : index
    %c0_55 = arith.constant 0 : index
    %26 = vector.load %arg5[%c2_52, %c2_53, %c0_54, %c0_55] : memref<6x6x8x32xf32, #tpu.memory_space<vmem>>, vector<4x4x8x32xf32>
    %27 = tpu.concatenate %19, %20, %21, %22, %23, %24, %25, %26 in 3 : vector<4x4x8x32xf32>, vector<4x4x8x32xf32>, vector<4x4x8x32xf32>, vector<4x4x8x32xf32>, vector<4x4x8x32xf32>, vector<4x4x8x32xf32>, vector<4x4x8x32xf32>, vector<4x4x8x32xf32> -> vector<4x4x8x256xf32>
    %c0_56 = arith.constant 0 : index
    %c0_57 = arith.constant 0 : index
    %c0_58 = arith.constant 0 : index
    %c0_59 = arith.constant 0 : index
    %c0_60 = arith.constant 0 : index
    %28 = vector.load %arg4[%c0_56, %c0_57, %c0_58, %c0_59, %c0_60] : memref<1x4x4x8x256xf32, #tpu.memory_space<vmem>>, vector<1x4x4x8x256xf32>
    %29 = vector.shape_cast %28 : vector<1x4x4x8x256xf32> to vector<4x4x8x256xf32>
    %30 = vector.shape_cast %27 : vector<4x4x8x256xf32> to vector<1x4x4x8x256xf32>
    tpu.vector_store %arg4[%c0_56, %c0_57, %c0_58, %c0_59, %c0_60], %30 {strides = array<i32>} : memref<1x4x4x8x256xf32, #tpu.memory_space<vmem>>, vector<1x4x4x8x256xf32>,
    return
  }
  func.func @transform_0(%arg0: i32, %arg1: i32, %arg2: i32) -> (i32, i32, i32, i32, i32) {
    %c0_i32 = arith.constant 0 : i32
    %c0_i32_0 = arith.constant 0 : i32
    %c0_i32_1 = arith.constant 0 : i32
    %c0_i32_2 = arith.constant 0 : i32
    return %arg0, %c0_i32, %c0_i32_0, %arg1, %c0_i32_1 : i32, i32, i32, i32, i32
  }
  func.func @transform_1(%arg0: i32, %arg1: i32, %arg2: i32) -> (i32, i32, i32, i32, i32) {
    %c0_i32 = arith.constant 0 : i32
    %c0_i32_0 = arith.constant 0 : i32
    %c0_i32_1 = arith.constant 0 : i32
    return %arg0, %arg2, %c0_i32, %arg1, %c0_i32_0 : i32, i32, i32, i32, i32
  }
}

</mosaic_0001>

<bundles_post_ra>
// kernel: tpu_custom_call.1
= control target key start
LH: loop header
LB: loop body
LE: loop exit
PB: predicated region body
PF: predicated region fallthrough
CT: control target
= control target key end

     0   :  { %6 = vsyncpa [#allocation4], 0  ;;  %s1944_s0 = inlined_call_operand.hbm [shape: f32[2,4,4,8,32], index: 0, kind: input, shape index: {}]   ;;  %s1945_s1 = inlined_call_operand.hbm [shape: f32[2,4,4,8,256], index: 1, kind: output, shape index: {}]  }
   0x1   :  { %8 = vsyncpa [#allocation4 + $0x1], 0 }
   0x2   :  { %9 = vsyncpa [#allocation5], 0 }
   0x3   :  { %11 = vsyncpa [#allocation5 + $0x1], 0  ;;  %s1198_s6 = smov 0   ;;  %s1200_s7 = smov 0  }
   0x4   :  { %s1202_s8 = smov 0   ;;  %s1204_s9 = smov 0  }
   0x5   :  { %s1206_s10 = smov 0   ;;  %s1208_s11 = smov 0  }
   0x6 LB: > { %s977_s12 = sadd.s32 4294967295, %s1176_s11   ;;  %s978_s13 = sadd.s32 4294967294, %s1176_s11   ;;  %s1176_s11 = sphi %s1208_s11, %s17_s11   ;;  %s1172_s10 = sphi %s1206_s10, %s1975_s10   ;;  %s1168_s9 = sphi %s1204_s9, %s1974_s9   ;;  %s1164_s8 = sphi %s1202_s8, %s1973_s8   ;;  %s1160_s7 = sphi %s1200_s7, %s1972_s7   ;;  %s1156_s6 = sphi %s1198_s6, %s1971_s6  }
   0x7   : > { %s36_s14 = sadd.s32 1, %s1172_s10  ;;  %s45_s15 = sadd.s32 1, %s1164_s8 }
   0x8   : > { %p38_p0 = scmp.ge.s32.totalorder %s36_s14, 2  ;;  %p52_p1 = scmp.ne.s32.totalorder %s1164_s8, %s1160_s7 }
   0x9   : > { %p53_p2 = scmp.eq.s32.totalorder %s1176_s11, 0  ;;  %p58_p3 = scmp.ne.s32.totalorder %s1160_s7, %s1156_s6 }
   0xa   : > { %s1977_s14 = smov (%p38_p0, %s36_s14), 0  ;;  %p59_p5 = scmp.eq.s32.totalorder %s977_s12, 0 }
   0xb   : > { %p1239_p4 = por %p53_p2, %p52_p1  ;;  %s40_s17 = ssub.s32 %s1172_s10, %s1977_s14 }
   0xc   : > { %p86_p6 = scmp.eq.s32.totalorder %s977_s12, 1  ;;  %p43_p7 = scmp.eq.s32.totalorder %s40_s17, 0 }
   0xd   : > { %p1245_p8 = por %p59_p5, %p58_p3  ;;  %p92_p10 = scmp.eq.s32.totalorder %s978_s13, 1 }
   0xe   : > { %p1249_p9 = por %p86_p6, %p52_p1  ;;  %p1006_p13 = scmp.lt.s32.totalorder %s1176_s11, 2 }
   0xf   : > { %s1254_s20 = scalar_select %p43_p7, %s1164_s8, %s45_s15  }
  0x10   : > { %s1954_s19 = scalar_select %p1249_p9, 1, 0 }
  0x11   : > { %p1256_p11 = por %p92_p10, %p58_p3  ;;  %s112_s22 = sand.u32 1, %s1164_s8  }
  0x12   : > { %s981_s23 = sshll.u32 %s112_s22, 7  ;;  %s992_s24 = sshll.u32 %s1172_s10, 11 }
  0x13   : > { %s1955_s21 = scalar_select %p1256_p11, 1, 0 }
  0x14   : > { %s1267_s27 = scalar_lea.hbm %s1944_s0, %s992_s24  ;;  %s116_s28 = scalar_lea.vmem [#allocation3], %s981_s23 }
  0x15   : > { %s124_s29 = sshll.u32 %s116_s28, 4  ;;  %p1273_p0 = pnand %p1006_p13, %p1239_p4  ;;  %s1269_s29 = int_to_ptr.vmem [resolvable:$true] %s124_s29 }
  0x16   : > { %s1278_s2 = scalar_lea.sflag [#allocation4], %s112_s22  ;;  %s1064_s3 = scalar_lea.hbm %s1267_s27, 2048 }
  0x17   : > { %p1065_p2 = scmp.ne.s32.totalorder %s1267_s27, %s1064_s3  ;;  %p1066_p3 = pneg %p1273_p0 }
  0x18   : > { %s1069_s12 = scalar_lea.hbm %s1944_s0, 4096  ;;  %p1070_p4 = scmp.lt.u32.totalorder %s1267_s27, %s1944_s0 }
  0x19   : > { %p1067_p5 = pnand %p1066_p3, %p1065_p2  ;;  %p1071_p7 = scmp.lt.u32.totalorder %s1069_s12, %s1064_s3 }
  0x1a   : > { %p1073_p13 = scmp.lt.u32.totalorder %s1064_s3, %s1267_s27 }
  0x1b   : > { %p1068_p6 = pneg %p1067_p5  ;;  %p1072_p10 = por %p1071_p7, %p1070_p4 }
  0x1d   : > { %p1074_p12 = por %p1073_p13, %p1072_p10 }
  0x1f   : > { %p1075_p1 = pnand %p1074_p12, %p1068_p6 }
  0x21   : > { %1078 = shalt.err (!%p1075_p1)
}
  0x22   : > { %s1079_s16 = scalar_lea.vmem %s1269_s29, 2048  ;;  %s1178_s17 = smov [#allocation3]  }
  0x23   : > { %p1080_p2 = scmp.ne.s32.totalorder %s1269_s29, %s1079_s16  ;;  %s1084_s22 = sshll.u32 %s1178_s17, 4  ;;  %s1085_s22 = int_to_ptr.vmem [resolvable:$false] %s1084_s22 }
  0x24   : > { %s1086_s23 = scalar_lea.vmem %s1085_s22, 4096  ;;  %p1087_p9 = scmp.lt.s32.totalorder %s1269_s29, %s1085_s22 }
  0x25   : > { %p1082_p5 = pnand %p1080_p2, %p1066_p3  ;;  %p1088_p4 = scmp.lt.s32.totalorder %s1086_s23, %s1079_s16 }
  0x27   : > { %p1083_p11 = pneg %p1082_p5  ;;  %p1089_p7 = por %p1088_p4, %p1087_p9 }
  0x29   : > { %p1090_p10 = pnand %p1089_p7, %p1083_p11 }
  0x2b   : > { %1093 = shalt.err (!%p1090_p10)
}
  0x2c   : > { %s1179_s24 = smov 128   ;;  %s1180_s25 = smov 8  }
  0x2d   : > { %1001 = dma.hbm_to_vmem [thread:$0]  (!%p1273_p0), %s1267_s27, 2048, %s1269_s29, %s1278_s2, %s1179_s24, %s1179_s24, %s1180_s25  }
  0x2e   : > { %p132_p12 = scmp.lt.s32.totalorder %s1176_s11, 3  ;;  %p1957_p1 = scmp.ge.s32.totalorder %s1176_s11, 1 }
  0x30   : > { %p133_p3 = pnand %p1957_p1, %p132_p12 }
  0x32   : > { %136 = sbr.rel (%p133_p3) target bundleno = 391 (0x187), region = 24 }
  0x39   : > { %s1310_s26 = sand.u32 1, %s1160_s7  }
  0x3a   : > { %s985_s28 = sshll.u32 %s1310_s26, 7  ;;  %s139_s3 = scalar_lea.sflag [#allocation4], %s1310_s26 }
  0x3b   : > { %s1314_s4 = scalar_lea.vmem [#allocation3], %s985_s28 }
  0x3c   : > { %1147 = dma.done.wait (%p1245_p8), %s139_s3, 2048  }
  0x3d   : > { %1149 = vsyncadd (%p1245_p8), %s139_s3, 4294965248  ;;  %vm162_vm0 = vcmask 261120   ;;  %v1181_v0 = vmov 0.0   ;;  %v187_v1 = vld [vmem:[%s1314_s4 + $0x8] sm:$0xff]  ;;  %v186_v2 = vld [vmem:[%s1314_s4] sm:$0xff]  ;;  %s1182_s18 = smov 32  }
  0x3e   : > { %166 = vst.msk [vmem:[#allocation2 + $0x18] sm:$0xff] %vm162_vm0, %v1181_v0  ;;  %163 = vst.msk [vmem:[#allocation2] sm:$0xff] %vm162_vm0, %v1181_v0  ;;  %v189_v3 = vld [vmem:[%s1314_s4 + $0x18] sm:$0xff]  ;;  %v188_v8 = vld [vmem:[%s1314_s4 + $0x10] sm:$0xff]  ;;  %s1183_s27 = smov 64   ;;  %s1184_s29 = smov 96  }
  0x3f   : > { %164 = vst.msk [vmem:[#allocation2 + $0x8] sm:$0xff] %vm162_vm0, %v1181_v0  ;;  %165 = vst.msk [vmem:[#allocation2 + $0x10] sm:$0xff] %vm162_vm0, %v1181_v0  ;;  %v191_v9 = vld [vmem:[%s1314_s4 + $0x28] sm:$0xff]  ;;  %v190_v10 = vld [vmem:[%s1314_s4 + $0x20] sm:$0xff]  ;;  %s986_s30 = sshll.u32 %s1310_s26, 8  ;;  %vm753_vm1 = vcmask 523264  }
  0x40   : > { %167 = vst.msk [vmem:[#allocation2 + $0x20] sm:$0xff] %vm162_vm0, %v1181_v0  ;;  %168 = vst.msk [vmem:[#allocation2 + $0x28] sm:$0xff] %vm162_vm0, %v1181_v0  ;;  %v193_v11 = vld [vmem:[%s1314_s4 + $0x38] sm:$0xff]  ;;  %v192_v12 = vld [vmem:[%s1314_s4 + $0x30] sm:$0xff]  ;;  %vm770_vm2 = vcmask 785408   ;;  %s1663_s2 = scalar_lea.vmem [#allocation6], %s986_s30 }
  0x41   : > { %170 = vst.msk [vmem:[#allocation2 + $0xf0] sm:$0xff] %vm162_vm0, %v1181_v0  ;;  %171 = vst.msk [vmem:[#allocation2 + $0xf8] sm:$0xff] %vm162_vm0, %v1181_v0  ;;  %v195_v13 = vld [vmem:[%s1314_s4 + $0x48] sm:$0xff]  ;;  %v194_v14 = vld [vmem:[%s1314_s4 + $0x40] sm:$0xff]  ;;  %s993_s5 = sshll.u32 %s1168_s9, 12  ;;  %s886_s12 = sshll.u32 %s1663_s2, 4  ;;  %s1887_s12 = int_to_ptr.vmem [resolvable:$true] %s886_s12 }
  0x42   : > { %172 = vst.msk [vmem:[#allocation2 + $0x100] sm:$0xff] %vm162_vm0, %v1181_v0  ;;  %173 = vst.msk [vmem:[#allocation2 + $0x108] sm:$0xff] %vm162_vm0, %v1181_v0  ;;  %v197_v15 = vld [vmem:[%s1314_s4 + $0x58] sm:$0xff]  ;;  %v196_v16 = vld [vmem:[%s1314_s4 + $0x50] sm:$0xff]  ;;  %s1885_s15 = scalar_lea.hbm %s1945_s1, %s993_s5  ;;  %s868_s16 = scalar_lea.sflag [#allocation5], %s1310_s26 }
  0x43   : > { %174 = vst.msk [vmem:[#allocation2 + $0x110] sm:$0xff] %vm162_vm0, %v1181_v0  ;;  %175 = vst.msk [vmem:[#allocation2 + $0x118] sm:$0xff] %vm162_vm0, %v1181_v0  ;;  %v198_v17 = vld [vmem:[%s1314_s4 + $0x60] sm:$0xff]  ;;  %v200_v20 = vld [vmem:[%s1314_s4 + $0x70] sm:$0xff]  ;;  %s1094_s17 = scalar_lea.vmem %s1887_s12, 4096  ;;  %p1968_p9 = scmp.ne.s32.totalorder %s1954_s19, 0 }
  0x44   : > { %177 = vst.msk [vmem:[#allocation2 + $0x30] sm:$0xff] %vm162_vm0, %v1181_v0  ;;  %178 = vst.msk [vmem:[#allocation2 + $0x60] sm:$0xff] %vm162_vm0, %v1181_v0  ;;  %v199_v21 = vld [vmem:[%s1314_s4 + $0x68] sm:$0xff]  ;;  %v201_v24 = vld [vmem:[%s1314_s4 + $0x78] sm:$0xff]  ;;  %p1095_p8 = scmp.ne.s32.totalorder %s1887_s12, %s1094_s17  ;;  %s1185_s22 = smov [#allocation6]  }
  0x45   : > { %179 = vst.msk [vmem:[#allocation2 + $0x90] sm:$0xff] %vm162_vm0, %v1181_v0  ;;  %180 = vst.msk [vmem:[#allocation2 + $0xc0] sm:$0xff] %vm162_vm0, %v1181_v0  ;;  %v1343_v4 = vld [vmem:[#allocation2 + $0x18] sm:$0xff]  ;;  %s1098_s23 = sshll.u32 %s1185_s22, 4  ;;  %s1099_s23 = int_to_ptr.vmem [resolvable:$false] %s1098_s23 }
  0x46   : > { %182 = vst.msk [vmem:[#allocation2 + $0x58] sm:$0xff] %vm162_vm0, %v1181_v0  ;;  %183 = vst.msk [vmem:[#allocation2 + $0x88] sm:$0xff] %vm162_vm0, %v1181_v0  ;;  %v1345_v5 = vld [vmem:[#allocation2 + $0x8] sm:$0xff]  ;;  %373 = vrot.lane.b32.xlu1 %v1343_v4, %s1182_s18  ;;  %v1356_v7 = vld [vmem:[#allocation2 + $0x10] sm:$0xff]  ;;  %p1096_p11 = pnand %p1095_p8, %p1968_p9  ;;  %s1100_s24 = scalar_lea.vmem %s1099_s23, 8192 }
  0x47   : > { %184 = vst.msk [vmem:[#allocation2 + $0xb8] sm:$0xff] %vm162_vm0, %v1181_v0  ;;  %185 = vst.msk [vmem:[#allocation2 + $0xe8] sm:$0xff] %vm162_vm0, %v1181_v0  ;;  %v1347_v6 = vld [vmem:[#allocation2 + $0x20] sm:$0xff]  ;;  %369 = vrot.lane.b32.xlu0 %v1345_v5, %s1182_s18  ;;  %v256_v33 = vld [vmem:[#allocation2 + $0x28] sm:$0xff]  ;;  %p1101_p6 = scmp.lt.s32.totalorder %s1887_s12, %s1099_s23  ;;  %p1102_p13 = scmp.lt.s32.totalorder %s1100_s24, %s1094_s17 }
  0x48   : > { %204 = vst.msk [vmem:[#allocation2 + $0x40] sm:$0xff] %vm162_vm0, %v187_v1  ;;  %203 = vst.msk [vmem:[#allocation2 + $0x38] sm:$0xff] %vm162_vm0, %v186_v2  ;;  %v316_v46 = vld [vmem:[#allocation2 + $0xf8] sm:$0xff]  ;;  %v315_v47 = vld [vmem:[#allocation2 + $0xf0] sm:$0xff]  ;;  %p1097_p0 = pneg %p1096_p11 }
  0x49   : > { %206 = vst.msk [vmem:[#allocation2 + $0x50] sm:$0xff] %vm162_vm0, %v189_v3  ;;  %205 = vst.msk [vmem:[#allocation2 + $0x48] sm:$0xff] %vm162_vm0, %v188_v8  ;;  %v1545_v50 = vld [vmem:[#allocation2 + $0x108] sm:$0xff]  ;;  %v1547_v51 = vld [vmem:[#allocation2 + $0x100] sm:$0xff]  ;;  %p1103_p2 = por %p1102_p13, %p1101_p6 }
  0x4a   : > { %208 = vst.msk [vmem:[#allocation2 + $0x70] sm:$0xff] %vm162_vm0, %v191_v9  ;;  %207 = vst.msk [vmem:[#allocation2 + $0x68] sm:$0xff] %vm162_vm0, %v190_v10  ;;  %375 = vrot.lane.b32.xlu1 %v1347_v6, %s1182_s18  ;;  %v1605_v8 = vld [vmem:[#allocation2 + $0x110] sm:$0xff] }
  0x4b   : > { %210 = vst.msk [vmem:[#allocation2 + $0x80] sm:$0xff] %vm162_vm0, %v193_v11  ;;  %209 = vst.msk [vmem:[#allocation2 + $0x78] sm:$0xff] %vm162_vm0, %v192_v12  ;;  %371 = vrot.lane.b32.xlu0 %v1356_v7, %s1182_s18  ;;  %v1473_v37 = vld [vmem:[#allocation2 + $0x30] sm:$0xff]  ;;  %v1483_v38 = vld [vmem:[#allocation2 + $0x60] sm:$0xff]  ;;  %p1104_p5 = pnand %p1103_p2, %p1097_p0 }
  0x4c   : > { %212 = vst.msk [vmem:[#allocation2 + $0xa0] sm:$0xff] %vm162_vm0, %v195_v13  ;;  %211 = vst.msk [vmem:[#allocation2 + $0x98] sm:$0xff] %vm162_vm0, %v194_v14  ;;  %v1493_v39 = vld [vmem:[#allocation2 + $0x90] sm:$0xff]  ;;  %v281_v41 = vld [vmem:[#allocation2 + $0xc0] sm:$0xff] }
  0x4d   : > { %214 = vst.msk [vmem:[#allocation2 + $0xb0] sm:$0xff] %vm162_vm0, %v197_v15  ;;  %213 = vst.msk [vmem:[#allocation2 + $0xa8] sm:$0xff] %vm162_vm0, %v196_v16  ;;  %v1447_v34 = vld [vmem:[#allocation2 + $0x58] sm:$0xff]  ;;  %v1457_v35 = vld [vmem:[#allocation2 + $0x88] sm:$0xff] }
  0x4e   : > { %215 = vst.msk [vmem:[#allocation2 + $0xc8] sm:$0xff] %vm162_vm0, %v198_v17  ;;  %217 = vst.msk [vmem:[#allocation2 + $0xd8] sm:$0xff] %vm162_vm0, %v200_v20  ;;  %v1467_v36 = vld [vmem:[#allocation2 + $0xb8] sm:$0xff] }
  0x4f   : > { %v1381_v18 = vld [vmem:[#allocation2 + $0x40] sm:$0xff]  ;;  %v1383_v19 = vld [vmem:[#allocation2 + $0x38] sm:$0xff]  ;;  %216 = vst.msk [vmem:[#allocation2 + $0xd0] sm:$0xff] %vm162_vm0, %v199_v21  ;;  %218 = vst.msk [vmem:[#allocation2 + $0xe0] sm:$0xff] %vm162_vm0, %v201_v24 }
  0x50   : > { %379 = vrot.lane.b32.xlu1 %v1381_v18, %s1182_s18  ;;  %377 = vrot.lane.b32.xlu0 %v1383_v19, %s1182_s18  ;;  %v1394_v22 = vld [vmem:[#allocation2 + $0x50] sm:$0xff]  ;;  %v1396_v23 = vld [vmem:[#allocation2 + $0x48] sm:$0xff]  ;;  %1960 = vst [vmem:[#allocation11_spill] sm:$0xff] %v1467_v36  ;;  %v219_v21 = vld [vmem:[#allocation2] sm:$0xff] }
  0x51   : > { %v1403_v25 = vld [vmem:[#allocation2 + $0x70] sm:$0xff]  ;;  %v1405_v26 = vld [vmem:[#allocation2 + $0x68] sm:$0xff] }
  0x52   : > { %v1412_v27 = vld [vmem:[#allocation2 + $0x80] sm:$0xff]  ;;  %v1414_v28 = vld [vmem:[#allocation2 + $0x78] sm:$0xff] }
  0x53   : > { %1958 = vst [vmem:[#allocation9_spill] sm:$0xff] %v1412_v27  ;;  %v1420_v29 = vld [vmem:[#allocation2 + $0xa0] sm:$0xff]  ;;  %v1422_v30 = vld [vmem:[#allocation2 + $0x98] sm:$0xff] }
  0x54   : > { %383 = vrot.lane.b32.xlu1 %v1394_v22, %s1182_s18  ;;  %381 = vrot.lane.b32.xlu0 %v1396_v23, %s1182_s18  ;;  %v1428_v31 = vld [vmem:[#allocation2 + $0xb0] sm:$0xff]  ;;  %v1430_v32 = vld [vmem:[#allocation2 + $0xa8] sm:$0xff] }
  0x55   : > { %1959 = vst [vmem:[#allocation10_spill] sm:$0xff] %v1428_v31  ;;  %v282_v40 = vld [vmem:[#allocation2 + $0xc8] sm:$0xff]  ;;  %v1505_v42 = vld [vmem:[#allocation2 + $0xd8] sm:$0xff] }
  0x56   : > { %1961 = vst [vmem:[#allocation12_spill] sm:$0xff] %v1505_v42  ;;  %v1507_v43 = vld [vmem:[#allocation2 + $0xd0] sm:$0xff]  ;;  %v1596_v0 = vld [vmem:[#allocation2 + $0xe0] sm:$0xff] }
  0x57   : > { %1962 = vst [vmem:[#allocation13_spill] sm:$0xff] %v1507_v43 }
  0x58   : > { %387 = vrot.lane.b32.xlu1 %v1403_v25, %s1182_s18  ;;  %385 = vrot.lane.b32.xlu0 %v1405_v26, %s1182_s18 }
  0x5c   : > { %391 = vrot.lane.b32.xlu1 %v1412_v27, %s1182_s18  ;;  %389 = vrot.lane.b32.xlu0 %v1414_v28, %s1182_s18 }
  0x60   : > { %395 = vrot.lane.b32.xlu1 %v1420_v29, %s1182_s18  ;;  %393 = vrot.lane.b32.xlu0 %v1422_v30, %s1182_s18 }
  0x64   : > { %399 = vrot.lane.b32.xlu1 %v1428_v31, %s1182_s18  ;;  %397 = vrot.lane.b32.xlu0 %v1430_v32, %s1182_s18 }
  0x68   : > { %435 = vrot.lane.b32.xlu1 %v1343_v4, %s1183_s27  ;;  %433 = vrot.lane.b32.xlu0 %v1356_v7, %s1183_s27 }
  0x6c   : > { %439 = vrot.lane.b32.xlu1 %v256_v33, %s1183_s27  ;;  %437 = vrot.lane.b32.xlu0 %v1347_v6, %s1183_s27 }
  0x70   : > { %443 = vrot.lane.b32.xlu1 %v1396_v23, %s1183_s27  ;;  %441 = vrot.lane.b32.xlu0 %v1381_v18, %s1183_s27 }
  0x74   : > { %447 = vrot.lane.b32.xlu1 %v1447_v34, %s1183_s27  ;;  %445 = vrot.lane.b32.xlu0 %v1394_v22, %s1183_s27 }
  0x78   : > { %451 = vrot.lane.b32.xlu1 %v1414_v28, %s1183_s27  ;;  %449 = vrot.lane.b32.xlu0 %v1403_v25, %s1183_s27 }
  0x7c   : > { %455 = vrot.lane.b32.xlu1 %v1457_v35, %s1183_s27  ;;  %453 = vrot.lane.b32.xlu0 %v1412_v27, %s1183_s27 }
  0x80   : > { %459 = vrot.lane.b32.xlu1 %v1430_v32, %s1183_s27  ;;  %457 = vrot.lane.b32.xlu0 %v1420_v29, %s1183_s27 }
  0x84   : > { %463 = vrot.lane.b32.xlu1 %v1467_v36, %s1183_s27  ;;  %461 = vrot.lane.b32.xlu0 %v1428_v31, %s1183_s27 }
  0x88   : > { %499 = vrot.lane.b32.xlu1 %v1383_v19, %s1184_s29  ;;  %497 = vrot.lane.b32.xlu0 %v1473_v37, %s1184_s29 }
  0x8c   : > { %503 = vrot.lane.b32.xlu1 %v1396_v23, %s1184_s29  ;;  %501 = vrot.lane.b32.xlu0 %v1381_v18, %s1184_s29 }
  0x90   : > { %507 = vrot.lane.b32.xlu1 %v1405_v26, %s1184_s29  ;;  %505 = vrot.lane.b32.xlu0 %v1483_v38, %s1184_s29 }
  0x94   : > { %511 = vrot.lane.b32.xlu1 %v1414_v28, %s1184_s29  ;;  %509 = vrot.lane.b32.xlu0 %v1403_v25, %s1184_s29 }
  0x98   : > { %515 = vrot.lane.b32.xlu1 %v1422_v30, %s1184_s29  ;;  %513 = vrot.lane.b32.xlu0 %v1493_v39, %s1184_s29 }
  0x9c   : > { %519 = vrot.lane.b32.xlu1 %v1430_v32, %s1184_s29  ;;  %517 = vrot.lane.b32.xlu0 %v1420_v29, %s1184_s29 }
  0xa0   : > { %523 = vrot.lane.b32.xlu1 %v282_v40, %s1184_s29  ;;  %521 = vrot.lane.b32.xlu0 %v281_v41, %s1184_s29 }
  0xa4   : > { %527 = vrot.lane.b32.xlu1 %v1505_v42, %s1184_s29  ;;  %525 = vrot.lane.b32.xlu0 %v1507_v43, %s1184_s29 }
  0xa8   : > { %563 = vrot.lane.b32.xlu1 %v1405_v26, %s1182_s18  ;;  %561 = vrot.lane.b32.xlu0 %v1483_v38, %s1182_s18 }
  0xac   : > { %567 = vrot.lane.b32.xlu1 %v1414_v28, %s1182_s18  ;;  %565 = vrot.lane.b32.xlu0 %v1403_v25, %s1182_s18 }
  0xb0   : > { %571 = vrot.lane.b32.xlu1 %v1422_v30, %s1182_s18  ;;  %569 = vrot.lane.b32.xlu0 %v1493_v39, %s1182_s18 }
  0xb4   : > { %575 = vrot.lane.b32.xlu1 %v1430_v32, %s1182_s18  ;;  %573 = vrot.lane.b32.xlu0 %v1420_v29, %s1182_s18 }
  0xb8   : > { %579 = vrot.lane.b32.xlu1 %v282_v40, %s1182_s18  ;;  %577 = vrot.lane.b32.xlu0 %v281_v41, %s1182_s18  ;;  %v1531_v44 = vpop.permute.xlu1 %373 }
  0xb9   : > { %v1533_v45 = vpop.permute.xlu0 %369 }
  0xbc   : > { %583 = vrot.lane.b32.xlu1 %v1505_v42, %s1182_s18  ;;  %581 = vrot.lane.b32.xlu0 %v1507_v43, %s1182_s18  ;;  %v1539_v48 = vpop.permute.xlu1 %375 }
  0xbd   : > { %v1541_v49 = vpop.permute.xlu0 %371 }
  0xbe   : > { %v738_v41 = vsel %vm162_vm0, %v1345_v5, %v1541_v49  ;;  %v739_v5 = vsel %vm162_vm0, %v1356_v7, %v1531_v44  ;;  %v352_v44 = vld [vmem:[#allocation2 + $0x118] sm:$0xff] }
  0xc0   : > { %587 = vrot.lane.b32.xlu1 %v316_v46, %s1182_s18  ;;  %585 = vrot.lane.b32.xlu0 %v315_v47, %s1182_s18 }
  0xc2   : > { %v1549_v52 = vpop.permute.xlu1 %379  ;;  %v1551_v53 = vpop.permute.xlu0 %377 }
  0xc3   : > { %v741_v7 = vsel %vm162_vm0, %v1473_v37, %v1551_v53 }
  0xc4   : > { %591 = vrot.lane.b32.xlu1 %v1545_v50, %s1182_s18  ;;  %589 = vrot.lane.b32.xlu0 %v1547_v51, %s1182_s18 }
  0xc6   : > { %v1557_v54 = vpop.permute.xlu1 %383  ;;  %v1559_v55 = vpop.permute.xlu0 %381 }
  0xc7   : > { %v743_v37 = vsel %vm162_vm0, %v1381_v18, %v1559_v55 }
  0xc8   : > { %627 = vrot.lane.b32.xlu1 %v1403_v25, %s1183_s27  ;;  %625 = vrot.lane.b32.xlu0 %v1405_v26, %s1183_s27 }
  0xca   : > { %v1565_v56 = vpop.permute.xlu1 %387  ;;  %v1567_v57 = vpop.permute.xlu0 %385 }
  0xcb   : > { %v745_v55 = vsel %vm162_vm0, %v1483_v38, %v1567_v57 }
  0xcc   : > { %631 = vrot.lane.b32.xlu1 %v1412_v27, %s1183_s27  ;;  %629 = vrot.lane.b32.xlu0 %v1414_v28, %s1183_s27 }
  0xce   : > { %v1573_v58 = vpop.permute.xlu1 %391  ;;  %v1575_v59 = vpop.permute.xlu0 %389 }
  0xcf   : > { %v747_v38 = vsel %vm162_vm0, %v1403_v25, %v1575_v59 }
  0xd0   : > { %635 = vrot.lane.b32.xlu1 %v1420_v29, %s1183_s27  ;;  %633 = vrot.lane.b32.xlu0 %v1422_v30, %s1183_s27 }
  0xd2   : > { %v1581_v60 = vpop.permute.xlu1 %395  ;;  %v1583_v61 = vpop.permute.xlu0 %393 }
  0xd3   : > { %v749_v59 = vsel %vm162_vm0, %v1493_v39, %v1583_v61 }
  0xd4   : > { %639 = vrot.lane.b32.xlu1 %v1428_v31, %s1183_s27  ;;  %637 = vrot.lane.b32.xlu0 %v1430_v32, %s1183_s27 }
  0xd6   : > { %v1589_v62 = vpop.permute.xlu1 %399  ;;  %v1591_v63 = vpop.permute.xlu0 %397 }
  0xd7   : > { %v751_v39 = vsel %vm162_vm0, %v1420_v29, %v1591_v63 }
  0xd8   : > { %643 = vrot.lane.b32.xlu1 %v1507_v43, %s1183_s27  ;;  %641 = vrot.lane.b32.xlu0 %v282_v40, %s1183_s27  ;;  %v737_v40 = vsel %vm162_vm0, %v219_v21, %v1533_v45 }
  0xda   : > { %v436_v1 = vpop.permute.xlu1 %435  ;;  %v434_v2 = vpop.permute.xlu0 %433 }
  0xdb   : > { %v755_v47 = vsel %vm753_vm1, %v738_v41, %v436_v1 }
  0xdc   : > { %647 = vrot.lane.b32.xlu1 %v1596_v0, %s1183_s27  ;;  %645 = vrot.lane.b32.xlu0 %v1505_v42, %s1183_s27 }
  0xde   : > { %v440_v3 = vpop.permute.xlu1 %439  ;;  %v438_v6 = vpop.permute.xlu0 %437 }
  0xe0   : > { %651 = vrot.lane.b32.xlu1 %v1547_v51, %s1183_s27  ;;  %649 = vrot.lane.b32.xlu0 %v316_v46, %s1183_s27  ;;  %v1657_v46 = vld [vmem:[#allocation2 + $0xe8] sm:$0xff] }
  0xe2   : > { %v444_v9 = vpop.permute.xlu1 %443  ;;  %v442_v10 = vpop.permute.xlu0 %441 }
  0xe3   : > { %v758_v1 = vsel %vm753_vm1, %v741_v7, %v442_v10 }
  0xe4   : > { %655 = vrot.lane.b32.xlu1 %v1605_v8, %s1183_s27  ;;  %653 = vrot.lane.b32.xlu0 %v1545_v50, %s1183_s27 }
  0xe6   : > { %v1611_v11 = vpop.permute.xlu1 %447  ;;  %v1613_v12 = vpop.permute.xlu0 %445 }
  0xe7   : > { %v760_v53 = vsel %vm753_vm1, %v743_v37, %v1613_v12 }
  0xe8   : > { %691 = vrot.lane.b32.xlu1 %v1414_v28, %s1184_s29  ;;  %689 = vrot.lane.b32.xlu0 %v1403_v25, %s1184_s29 }
  0xea   : > { %v1619_v13 = vpop.permute.xlu1 %451  ;;  %v1621_v14 = vpop.permute.xlu0 %449 }
  0xeb   : > { %v762_v12 = vsel %vm753_vm1, %v745_v55, %v1621_v14 }
  0xec   : > { %695 = vrot.lane.b32.xlu1 %v1457_v35, %s1184_s29  ;;  %693 = vrot.lane.b32.xlu0 %v1412_v27, %s1184_s29 }
  0xee   : > { %v1627_v15 = vpop.permute.xlu1 %455  ;;  %v1629_v16 = vpop.permute.xlu0 %453 }
  0xef   : > { %v764_v57 = vsel %vm753_vm1, %v747_v38, %v1629_v16 }
  0xf0   : > { %699 = vrot.lane.b32.xlu1 %v1430_v32, %s1184_s29  ;;  %697 = vrot.lane.b32.xlu0 %v1420_v29, %s1184_s29 }
  0xf2   : > { %v1635_v17 = vpop.permute.xlu1 %459  ;;  %v1637_v20 = vpop.permute.xlu0 %457 }
  0xf3   : > { %v766_v16 = vsel %vm753_vm1, %v749_v59, %v1637_v20 }
  0xf4   : > { %703 = vrot.lane.b32.xlu1 %v1467_v36, %s1184_s29  ;;  %701 = vrot.lane.b32.xlu0 %v1428_v31, %s1184_s29  ;;  %v754_v31 = vsel %vm753_vm1, %v737_v40, %v434_v2 }
  0xf6   : > { %v1643_v24 = vpop.permute.xlu1 %463  ;;  %v1645_v33 = vpop.permute.xlu0 %461 }
  0xf7   : > { %v768_v61 = vsel %vm753_vm1, %v751_v39, %v1645_v33 }
  0xf8   : > { %707 = vrot.lane.b32.xlu1 %v1505_v42, %s1184_s29  ;;  %705 = vrot.lane.b32.xlu0 %v1507_v43, %s1184_s29 }
  0xfa   : > { %v500_v36 = vpop.permute.xlu1 %499  ;;  %v498_v27 = vpop.permute.xlu0 %497 }
  0xfb   : > { %v772_v42 = vsel %vm770_vm2, %v755_v47, %v500_v36  ;;  %v771_v43 = vsel %vm770_vm2, %v754_v31, %v498_v27  ;;  %v740_v27 = vsel %vm162_vm0, %v1343_v4, %v1539_v48  ;;  %v756_v36 = vsel %vm753_vm1, %v739_v5, %v438_v6 }
  0xfc   : > { %837 = vst [vmem:[%s1663_s2 + $0x10] sm:$0xff] %v772_v42  ;;  %835 = vst [vmem:[%s1663_s2] sm:$0xff] %v771_v43  ;;  %711 = vrot.lane.b32.xlu1 %v1657_v46, %s1184_s29  ;;  %709 = vrot.lane.b32.xlu0 %v1596_v0, %s1184_s29  ;;  %v757_v31 = vsel %vm753_vm1, %v740_v27, %v440_v3  ;;  %v742_v4 = vsel %vm162_vm0, %v1383_v19, %v1549_v52 }
  0xfd   : > { %v759_v48 = vsel %vm753_vm1, %v742_v4, %v444_v9  ;;  %v744_v19 = vsel %vm162_vm0, %v1396_v23, %v1557_v54  ;;  %v746_v54 = vsel %vm162_vm0, %v1405_v26, %v1565_v56  ;;  %v748_v26 = vsel %vm162_vm0, %v1414_v28, %v1573_v58 }
  0xfe   : > { %v504_v42 = vpop.permute.xlu1 %503  ;;  %v502_v43 = vpop.permute.xlu0 %501  ;;  %v761_v52 = vsel %vm753_vm1, %v744_v19, %v1611_v11  ;;  %v763_v11 = vsel %vm753_vm1, %v746_v54, %v1619_v13  ;;  %v765_v56 = vsel %vm753_vm1, %v748_v26, %v1627_v15  ;;  %v750_v58 = vsel %vm162_vm0, %v1422_v30, %v1581_v60 }
  0xff   : > { %v774_v45 = vsel %vm770_vm2, %v757_v31, %v504_v42  ;;  %v773_v49 = vsel %vm770_vm2, %v756_v36, %v502_v43  ;;  %v767_v15 = vsel %vm753_vm1, %v750_v58, %v1635_v17  ;;  %v752_v30 = vsel %vm162_vm0, %v1430_v32, %v1589_v62 }
 0x100   : > { %841 = vst [vmem:[%s1663_s2 + $0x30] sm:$0xff] %v774_v45  ;;  %839 = vst [vmem:[%s1663_s2 + $0x20] sm:$0xff] %v773_v49  ;;  %715 = vrot.lane.b32.xlu1 %v1545_v50, %s1184_s29  ;;  %713 = vrot.lane.b32.xlu0 %v1547_v51, %s1184_s29  ;;  %v769_v60 = vsel %vm753_vm1, %v752_v30, %v1643_v24 }
 0x102   : > { %v508_v2 = vpop.permute.xlu1 %507  ;;  %v506_v3 = vpop.permute.xlu0 %505 }
 0x103   : > { %v776_v50 = vsel %vm770_vm2, %v759_v48, %v508_v2  ;;  %v775_v51 = vsel %vm770_vm2, %v758_v1, %v506_v3 }
 0x104   : > { %845 = vst [vmem:[%s1663_s2 + $0x50] sm:$0xff] %v776_v50  ;;  %843 = vst [vmem:[%s1663_s2 + $0x40] sm:$0xff] %v775_v51  ;;  %719 = vrot.lane.b32.xlu1 %v352_v44, %s1184_s29  ;;  %717 = vrot.lane.b32.xlu0 %v1605_v8, %s1184_s29 }
 0x106   : > { %v512_v6 = vpop.permute.xlu1 %511  ;;  %v510_v9 = vpop.permute.xlu0 %509 }
 0x107   : > { %v778_v8 = vsel %vm770_vm2, %v761_v52, %v512_v6  ;;  %v777_v10 = vsel %vm770_vm2, %v760_v53, %v510_v9 }
 0x108   : > { %849 = vst [vmem:[%s1663_s2 + $0x70] sm:$0xff] %v778_v8  ;;  %847 = vst [vmem:[%s1663_s2 + $0x60] sm:$0xff] %v777_v10 }
 0x10a   : > { %v516_v21 = vpop.permute.xlu1 %515  ;;  %v514_v40 = vpop.permute.xlu0 %513 }
 0x10b   : > { %v780_v41 = vsel %vm770_vm2, %v763_v11, %v516_v21  ;;  %v779_v47 = vsel %vm770_vm2, %v762_v12, %v514_v40 }
 0x10c   : > { %853 = vst [vmem:[%s1663_s2 + $0x90] sm:$0xff] %v780_v41  ;;  %851 = vst [vmem:[%s1663_s2 + $0x80] sm:$0xff] %v779_v47 }
 0x10e   : > { %v520_v13 = vpop.permute.xlu1 %519  ;;  %v518_v14 = vpop.permute.xlu0 %517 }
 0x10f   : > { %v782_v5 = vsel %vm770_vm2, %v765_v56, %v520_v13  ;;  %v781_v27 = vsel %vm770_vm2, %v764_v57, %v518_v14 }
 0x110   : > { %857 = vst [vmem:[%s1663_s2 + $0xb0] sm:$0xff] %v782_v5  ;;  %855 = vst [vmem:[%s1663_s2 + $0xa0] sm:$0xff] %v781_v27 }
 0x112   : > { %v524_v31 = vpop.permute.xlu1 %523  ;;  %v522_v36 = vpop.permute.xlu0 %521 }
 0x113   : > { %v784_v42 = vsel %vm770_vm2, %v767_v15, %v524_v31  ;;  %v783_v43 = vsel %vm770_vm2, %v766_v16, %v522_v36 }
 0x114   : > { %861 = vst [vmem:[%s1663_s2 + $0xd0] sm:$0xff] %v784_v42  ;;  %859 = vst [vmem:[%s1663_s2 + $0xc0] sm:$0xff] %v783_v43 }
 0x116   : > { %v528_v17 = vpop.permute.xlu1 %527  ;;  %v526_v20 = vpop.permute.xlu0 %525 }
 0x117   : > { %v786_v45 = vsel %vm770_vm2, %v769_v60, %v528_v17  ;;  %v785_v49 = vsel %vm770_vm2, %v768_v61, %v526_v20 }
 0x118   : > { %865 = vst [vmem:[%s1663_s2 + $0xf0] sm:$0xff] %v786_v45  ;;  %863 = vst [vmem:[%s1663_s2 + $0xe0] sm:$0xff] %v785_v49  ;;  %v1963_v49 = vld [vmem:[#allocation9_spill] sm:$0xff] }
 0x11a   : > { %v564_v4 = vpop.permute.xlu1 %563  ;;  %v562_v62 = vpop.permute.xlu0 %561 }
 0x11b   : > { %v788_v57 = vsel %vm162_vm0, %v1396_v23, %v564_v4  ;;  %v787_v13 = vsel %vm162_vm0, %v1381_v18, %v562_v62 }
 0x11e   : > { %v568_v7 = vpop.permute.xlu1 %567  ;;  %v566_v44 = vpop.permute.xlu0 %565 }
 0x11f   : > { %v790_v23 = vsel %vm162_vm0, %v1447_v34, %v568_v7  ;;  %v789_v18 = vsel %vm162_vm0, %v1394_v22, %v566_v44 }
 0x122   : > { %v572_v48 = vpop.permute.xlu1 %571  ;;  %v570_v63 = vpop.permute.xlu0 %569 }
 0x123   : > { %v792_v34 = vsel %vm162_vm0, %v1414_v28, %v572_v48  ;;  %v791_v22 = vsel %vm162_vm0, %v1403_v25, %v570_v63 }
 0x126   : > { %v576_v1 = vpop.permute.xlu1 %575  ;;  %v574_v2 = vpop.permute.xlu0 %573 }
 0x127   : > { %v794_v28 = vsel %vm162_vm0, %v1457_v35, %v576_v1  ;;  %v793_v25 = vsel %vm162_vm0, %v1963_v49, %v574_v2 }
 0x12a   : > { %v1772_v24 = vpop.permute.xlu1 %579  ;;  %v1774_v3 = vpop.permute.xlu0 %577 }
 0x12b   : > { %v796_v35 = vsel %vm162_vm0, %v1430_v32, %v1772_v24  ;;  %v795_v1 = vsel %vm162_vm0, %v1420_v29, %v1774_v3  ;;  %v1964_v32 = vld [vmem:[#allocation11_spill] sm:$0xff]  ;;  %v1965_v29 = vld [vmem:[#allocation10_spill] sm:$0xff] }
 0x12e   : > { %v1776_v33 = vpop.permute.xlu1 %583  ;;  %v1778_v50 = vpop.permute.xlu0 %581 }
 0x12f   : > { %v798_v24 = vsel %vm162_vm0, %v1964_v32, %v1776_v33  ;;  %v797_v3 = vsel %vm162_vm0, %v1965_v29, %v1778_v50  ;;  %v1966_v33 = vld [vmem:[#allocation12_spill] sm:$0xff]  ;;  %v1967_v50 = vld [vmem:[#allocation13_spill] sm:$0xff] }
 0x132   : > { %v1780_v51 = vpop.permute.xlu1 %587  ;;  %v1782_v19 = vpop.permute.xlu0 %585 }
 0x136   : > { %v1784_v37 = vpop.permute.xlu1 %591  ;;  %v1786_v52 = vpop.permute.xlu0 %589 }
 0x13a   : > { %v628_v53 = vpop.permute.xlu1 %627  ;;  %v626_v6 = vpop.permute.xlu0 %625 }
 0x13b   : > { %v804_v14 = vsel %vm753_vm1, %v788_v57, %v628_v53  ;;  %v803_v5 = vsel %vm753_vm1, %v787_v13, %v626_v6  ;;  %v800_v13 = vsel %vm162_vm0, %v1966_v33, %v1780_v51 }
 0x13e   : > { %v632_v9 = vpop.permute.xlu1 %631  ;;  %v630_v8 = vpop.permute.xlu0 %629 }
 0x13f   : > { %v806_v16 = vsel %vm753_vm1, %v790_v23, %v632_v9  ;;  %v805_v31 = vsel %vm753_vm1, %v789_v18, %v630_v8 }
 0x142   : > { %v636_v10 = vpop.permute.xlu1 %635  ;;  %v634_v54 = vpop.permute.xlu0 %633 }
 0x143   : > { %v808_v39 = vsel %vm753_vm1, %v792_v34, %v636_v10  ;;  %v807_v60 = vsel %vm753_vm1, %v791_v22, %v634_v54 }
 0x146   : > { %v640_v55 = vpop.permute.xlu1 %639  ;;  %v638_v11 = vpop.permute.xlu0 %637 }
 0x147   : > { %v810_v4 = vsel %vm753_vm1, %v794_v28, %v640_v55  ;;  %v809_v62 = vsel %vm753_vm1, %v793_v25, %v638_v11 }
 0x14a   : > { %v644_v12 = vpop.permute.xlu1 %643  ;;  %v642_v21 = vpop.permute.xlu0 %641 }
 0x14b   : > { %v812_v2 = vsel %vm753_vm1, %v796_v35, %v644_v12  ;;  %v811_v53 = vsel %vm753_vm1, %v795_v1, %v642_v21 }
 0x14e   : > { %v648_v40 = vpop.permute.xlu1 %647  ;;  %v646_v41 = vpop.permute.xlu0 %645 }
 0x14f   : > { %v814_v54 = vsel %vm753_vm1, %v798_v24, %v648_v40  ;;  %v813_v55 = vsel %vm753_vm1, %v797_v3, %v646_v41  ;;  %v799_v40 = vsel %vm162_vm0, %v1967_v50, %v1782_v19  ;;  %v802_v19 = vsel %vm162_vm0, %v1657_v46, %v1784_v37 }
 0x152   : > { %v1788_v47 = vpop.permute.xlu1 %651  ;;  %v1790_v26 = vpop.permute.xlu0 %649 }
 0x153   : > { %v816_v41 = vsel %vm753_vm1, %v800_v13, %v1788_v47  ;;  %v801_v47 = vsel %vm162_vm0, %v1596_v0, %v1786_v52 }
 0x156   : > { %v1792_v38 = vpop.permute.xlu1 %655  ;;  %v1794_v56 = vpop.permute.xlu0 %653 }
 0x15a   : > { %v692_v27 = vpop.permute.xlu1 %691  ;;  %v690_v58 = vpop.permute.xlu0 %689 }
 0x15b   : > { %v820_v59 = vsel %vm770_vm2, %v804_v14, %v692_v27  ;;  %v819_v15 = vsel %vm770_vm2, %v803_v5, %v690_v58  ;;  %v815_v14 = vsel %vm753_vm1, %v799_v40, %v1790_v26  ;;  %v818_v26 = vsel %vm753_vm1, %v802_v19, %v1792_v38 }
 0x15c   : > { %838 = vst [vmem:[%s1663_s2 + $0x18] sm:$0xff] %v820_v59  ;;  %836 = vst [vmem:[%s1663_s2 + $0x8] sm:$0xff] %v819_v15  ;;  %v817_v59 = vsel %vm753_vm1, %v801_v47, %v1794_v56 }
 0x15e   : > { %v696_v36 = vpop.permute.xlu1 %695  ;;  %v694_v42 = vpop.permute.xlu0 %693 }
 0x15f   : > { %v822_v43 = vsel %vm770_vm2, %v806_v16, %v696_v36  ;;  %v821_v30 = vsel %vm770_vm2, %v805_v31, %v694_v42 }
 0x160   : > { %842 = vst [vmem:[%s1663_s2 + $0x38] sm:$0xff] %v822_v43  ;;  %840 = vst [vmem:[%s1663_s2 + $0x28] sm:$0xff] %v821_v30 }
 0x162   : > { %v700_v61 = vpop.permute.xlu1 %699  ;;  %v698_v17 = vpop.permute.xlu0 %697 }
 0x163   : > { %v824_v20 = vsel %vm770_vm2, %v808_v39, %v700_v61  ;;  %v823_v45 = vsel %vm770_vm2, %v807_v60, %v698_v17 }
 0x164   : > { %846 = vst [vmem:[%s1663_s2 + $0x58] sm:$0xff] %v824_v20  ;;  %844 = vst [vmem:[%s1663_s2 + $0x48] sm:$0xff] %v823_v45 }
 0x166   : > { %v704_v7 = vpop.permute.xlu1 %703  ;;  %v702_v44 = vpop.permute.xlu0 %701 }
 0x167   : > { %v826_v48 = vsel %vm770_vm2, %v810_v4, %v704_v7  ;;  %v825_v63 = vsel %vm770_vm2, %v809_v62, %v702_v44 }
 0x168   : > { %850 = vst [vmem:[%s1663_s2 + $0x78] sm:$0xff] %v826_v48  ;;  %848 = vst [vmem:[%s1663_s2 + $0x68] sm:$0xff] %v825_v63 }
 0x16a   : > { %v708_v6 = vpop.permute.xlu1 %707  ;;  %v706_v9 = vpop.permute.xlu0 %705 }
 0x16b   : > { %v828_v8 = vsel %vm770_vm2, %v812_v2, %v708_v6  ;;  %v827_v10 = vsel %vm770_vm2, %v811_v53, %v706_v9 }
 0x16c   : > { %854 = vst [vmem:[%s1663_s2 + $0x98] sm:$0xff] %v828_v8  ;;  %852 = vst [vmem:[%s1663_s2 + $0x88] sm:$0xff] %v827_v10 }
 0x16e   : > { %v712_v11 = vpop.permute.xlu1 %711  ;;  %v710_v12 = vpop.permute.xlu0 %709 }
 0x16f   : > { %v830_v21 = vsel %vm770_vm2, %v814_v54, %v712_v11  ;;  %v829_v57 = vsel %vm770_vm2, %v813_v55, %v710_v12 }
 0x170   : > { %858 = vst [vmem:[%s1663_s2 + $0xb8] sm:$0xff] %v830_v21  ;;  %856 = vst [vmem:[%s1663_s2 + $0xa8] sm:$0xff] %v829_v57 }
 0x172   : > { %v716_v5 = vpop.permute.xlu1 %715  ;;  %v714_v27 = vpop.permute.xlu0 %713 }
 0x173   : > { %v832_v58 = vsel %vm770_vm2, %v816_v41, %v716_v5  ;;  %v831_v51 = vsel %vm770_vm2, %v815_v14, %v714_v27 }
 0x174   : > { %862 = vst [vmem:[%s1663_s2 + $0xd8] sm:$0xff] %v832_v58  ;;  %860 = vst [vmem:[%s1663_s2 + $0xc8] sm:$0xff] %v831_v51 }
 0x176   : > { %v720_v46 = vpop.permute.xlu1 %719  ;;  %v718_v37 = vpop.permute.xlu0 %717 }
 0x177   : > { %v834_v0 = vsel %vm770_vm2, %v818_v26, %v720_v46  ;;  %v833_v52 = vsel %vm770_vm2, %v817_v59, %v718_v37 }
 0x178   : > { %866 = vst [vmem:[%s1663_s2 + $0xf8] sm:$0xff] %v834_v0  ;;  %864 = vst [vmem:[%s1663_s2 + $0xe8] sm:$0xff] %v833_v52 }
 0x179   : > { %1107 = shalt.err (!%p1104_p5)
}
 0x17a   : > { %s1108_s25 = scalar_lea.hbm %s1885_s15, 4096  ;;  %s1112_s4 = scalar_lea.hbm %s1945_s1, 8192 }
 0x17b   : > { %p1109_p4 = scmp.ne.s32.totalorder %s1885_s15, %s1108_s25  ;;  %p1113_p12 = scmp.lt.u32.totalorder %s1885_s15, %s1945_s1 }
 0x17c   : > { %p1114_p1 = scmp.lt.u32.totalorder %s1112_s4, %s1108_s25  ;;  %p1116_p8 = scmp.lt.u32.totalorder %s1108_s25, %s1885_s15 }
 0x17d   : > { %p1110_p7 = pnand %p1109_p4, %p1968_p9 }
 0x17e   : > { %p1115_p3 = por %p1114_p1, %p1113_p12 }
 0x17f   : > { %p1111_p10 = pneg %p1110_p7 }
 0x180   : > { %p1117_p11 = por %p1116_p8, %p1115_p3 }
 0x182   : > { %p1118_p0 = pnand %p1117_p11, %p1111_p10 }
 0x184   : > { %1121 = shalt.err (!%p1118_p0)
}
 0x185   : > { %s1186_s29 = smov 256   ;;  %s1187_s30 = smov 16  }
 0x186   : > { %996 = dma.vmem_to_hbm [thread:$0]  (%p1968_p9), %s1887_s12, 4096, %s1885_s15, %s868_s16, %s1186_s29, %s1186_s29, %s1187_s30  }
 0x187 PF: > { %s901_s2 = sand.u32 1, %s1156_s6   ;;  %p1969_p6 = scmp.ne.s32.totalorder %s1955_s21, 0 }
 0x188   : > { %p1970_p13 = scmp.ge.s32.totalorder %s1176_s11, 2  ;;  %s902_s5 = scalar_lea.sflag [#allocation5], %s901_s2 }
 0x18a   : > { %p1003_p2 = pnand %p1970_p13, %p1969_p6 }
 0x18c   : > { %1151 = dma.done.wait (!%p1003_p2), %s902_s5, 4096  }
 0x18d   : > { %1153 = vsyncadd (!%p1003_p2), %s902_s5, 4294963200  ;;  %s17_s11 = sadd.s32 1, %s1176_s11   ;;  %s1971_s6 = smov %s1160_s7 }
 0x18e   : > { %p14_p5 = scmp.ge.s32.totalorder %s17_s11, 4   ;;  %s1972_s7 = smov %s1164_s8 }
 0x18f   : > { %s1973_s8 = smov %s1254_s20  ;;  %s1974_s9 = smov %s1172_s10 }
 0x190   : > { %s1975_s10 = smov %s1977_s14  ;;  %16 = sbr.rel (!%p14_p5) target bundleno = 6 (0x6), region = 79 }
 0x197   :  { %907 = vsyncpa [#allocation4], 1 }
 0x198   :  { %909 = vsyncpa [#allocation4 + $0x1], 1 }
 0x199   :  { %910 = vsyncpa [#allocation5], 1 }
 0x19a   :  { %912 = vsyncpa [#allocation5 + $0x1], 1 }

</bundles_post_ra>
